<compile_context>
chip_gen: v7x
topology: tpu7x:2x2x1
jax: 0.10.0
libtpu: 0.0.40
codegen_flags: <defaults>
</compile_context>

<pallas_src>
import jax
import jax.numpy as jnp
from jax.experimental import pallas as pl
from jax.experimental.pallas import tpu as pltpu

LANE = 128      # lane width (last dim)
SUBLANE = 8     # f32 sublane width (second-last dim)


def _round_up(v, m):
    return (v + m - 1) // m * m


def resnet_kernel(x_ref, w1_ref, b1_ref, w2_ref, b2_ref, o_ref):
    """One batch row-tile: y = SiLU(SiLU(x@W1+b1)@W2+b2) + x, fully fused in VMEM."""
    x = x_ref[...]  # (tm, Np), f32

    # Linear 1 + SiLU   (MXU matmul, f32 accumulate; sigmoid -> EUP slot)
    h = jnp.dot(x, w1_ref[...], preferred_element_type=jnp.float32) + b1_ref[...]
    h = h * jax.nn.sigmoid(h)

    # Linear 2 + SiLU
    h = jnp.dot(h, w2_ref[...], preferred_element_type=jnp.float32) + b2_ref[...]
    h = h * jax.nn.sigmoid(h)

    # Residual add
    o_ref[...] = (h + x).astype(o_ref.dtype)


def resnet_forward(x, w1, b1, w2, b2, *, block_rows=256):
    """x: (B, N); w1, w2: (N, N) pre-transposed (in x out); b1, b2: (N,) or (1, N)."""
    B, N = x.shape
    b1 = jnp.asarray(b1).reshape(1, -1)
    b2 = jnp.asarray(b2).reshape(1, -1)

    f32 = jnp.float32
    Np = _round_up(N, LANE)                                   # lane-dense feature dim
    tm = min(_round_up(B, SUBLANE), _round_up(block_rows, SUBLANE))
    Bp = _round_up(B, tm)                                     # batch padded to tile

    # Zero-pad: exact (padded lanes produce 0 through SiLU and residual).
    x_p = jnp.zeros((Bp, Np), f32).at[:B, :N].set(x.astype(f32))
    w1_p = jnp.zeros((Np, Np), f32).at[:N, :N].set(w1.astype(f32))
    w2_p = jnp.zeros((Np, Np), f32).at[:N, :N].set(w2.astype(f32))
    b1_p = jnp.zeros((1, Np), f32).at[:, :N].set(b1.astype(f32))
    b2_p = jnp.zeros((1, Np), f32).at[:, :N].set(b2.astype(f32))

    grid = (Bp // tm,)

    cost = pl.CostEstimate(
        flops=2 * 2 * Bp * Np * Np,                 # two dense matmuls
        transcendentals=2 * Bp * Np,                # two sigmoids
        bytes_accessed=4 * (2 * Bp * Np + 2 * Np * Np + 2 * Np),
    )

    out_p = pl.pallas_call(
        resnet_kernel,
        out_shape=jax.ShapeDtypeStruct((Bp, Np), f32),
        grid=grid,
        in_specs=[
            pl.BlockSpec((tm, Np), lambda i: (i, 0)),   # x: tiled over batch rows
            pl.BlockSpec((Np, Np), lambda i: (0, 0)),   # w1: resident in VMEM
            pl.BlockSpec((1, Np), lambda i: (0, 0)),    # b1: resident
            pl.BlockSpec((Np, Np), lambda i: (0, 0)),   # w2: resident
            pl.BlockSpec((1, Np), lambda i: (0, 0)),    # b2: resident
        ],
        out_specs=pl.BlockSpec((tm, Np), lambda i: (i, 0)),
        compiler_params=pltpu.CompilerParams(
            dimension_semantics=("parallel",),          # shard row tiles across TCs (v7x)
        ),
        cost_estimate=cost,
    )(x_p, w1_p, b1_p, w2_p, b2_p)

    return out_p[:B, :N].astype(x.dtype)


def init_params(key, nodes):
    """Deterministic init mimicking nn.Linear default (uniform +/- 1/sqrt(fan_in))."""
    k1, k2, k3, k4 = jax.random.split(key, 4)
    bound = 1.0 / (nodes ** 0.5)
    # PyTorch stores weight as (out, in); we store the transpose (in, out).
    w1 = jax.random.uniform(k1, (nodes, nodes), jnp.float32, -bound, bound)
    b1 = jax.random.uniform(k2, (nodes,), jnp.float32, -bound, bound)
    w2 = jax.random.uniform(k3, (nodes, nodes), jnp.float32, -bound, bound)
    b2 = jax.random.uniform(k4, (nodes,), jnp.float32, -bound, bound)
    return w1, b1, w2, b2


def reference_forward(x, w1, b1, w2, b2):
    h = x @ w1 + b1[None, :]
    h = h * jax.nn.sigmoid(h)
    h = h @ w2 + b2[None, :]
    h = h * jax.nn.sigmoid(h)
    return h + x


if __name__ == "__main__":
    nodes = 20          # matches ResNet(nodes=20)
    batch = 8

    key = jax.random.PRNGKey(0)
    kx, kp = jax.random.split(key)
    x = jax.random.normal(kx, (batch, nodes), dtype=jnp.float32)
    w1, b1, w2, b2 = init_params(kp, nodes)

    out = resnet_forward(x, w1, b1, w2, b2)
    out = jax.block_until_ready(out)

    ref = reference_forward(x, w1, b1, w2, b2)
    assert out.shape == (batch, nodes)
    assert jnp.allclose(out, ref, atol=1e-5, rtol=1e-5), "mismatch vs JAX reference"

    print("KERNEL_OK")
</pallas_src>

<mosaic_0001>
module attributes {stable_mosaic.version = 11 : i64} {
  func.func @resnet_kernel(%arg0: i32, %arg1: memref<8x128xf32, #tpu.memory_space<vmem>>, %arg2: memref<128x128xf32, #tpu.memory_space<vmem>>, %arg3: memref<1x128xf32, #tpu.memory_space<vmem>>, %arg4: memref<128x128xf32, #tpu.memory_space<vmem>>, %arg5: memref<1x128xf32, #tpu.memory_space<vmem>>, %arg6: memref<8x128xf32, #tpu.memory_space<vmem>>) attributes {dimension_semantics = [#tpu.dimension_semantics<parallel>], iteration_bounds = array<i64: 1>, scalar_prefetch = 0 : i64, scratch_operands = 0 : i64, tpu.core_type = #tpu.core_type<tc>, window_params = [{transform_indices = @transform_0, window_bounds = array<i64: 8, 128>}, {pipeline_mode = #tpu.pipeline_mode<synchronous>, transform_indices = @transform_1, window_bounds = array<i64: 128, 128>}, {pipeline_mode = #tpu.pipeline_mode<synchronous>, transform_indices = @transform_2, window_bounds = array<i64: 1, 128>}, {pipeline_mode = #tpu.pipeline_mode<synchronous>, transform_indices = @transform_3, window_bounds = array<i64: 128, 128>}, {pipeline_mode = #tpu.pipeline_mode<synchronous>, transform_indices = @transform_4, window_bounds = array<i64: 1, 128>}, {transform_indices = @transform_5, window_bounds = array<i64: 8, 128>}]} {
    %c0 = arith.constant 0 : index
    %c0_0 = arith.constant 0 : index
    %0 = vector.load %arg1[%c0, %c0_0] : memref<8x128xf32, #tpu.memory_space<vmem>>, vector<8x128xf32>
    %c0_1 = arith.constant 0 : index
    %c0_2 = arith.constant 0 : index
    %1 = vector.load %arg2[%c0_1, %c0_2] : memref<128x128xf32, #tpu.memory_space<vmem>>, vector<128x128xf32>
    %cst = arith.constant dense<0.000000e+00> : vector<8x128xf32>
    %2 = tpu.matmul %0, %1, %cst {dimension_numbers = #tpu.dot_dimension_numbers<[1], [0], [0], [1], [0, 0, 1, 1], [], []>} : vector<8x128xf32>, vector<128x128xf32>, vector<8x128xf32> -> vector<8x128xf32>
    %c0_3 = arith.constant 0 : index
    %c0_4 = arith.constant 0 : index
    %3 = vector.load %arg3[%c0_3, %c0_4] : memref<1x128xf32, #tpu.memory_space<vmem>>, vector<1x128xf32>
    %4 = vector.broadcast %3 : vector<1x128xf32> to vector<8x128xf32>
    %5 = arith.addf %2, %4 : vector<8x128xf32>
    %6 = arith.negf %5 : vector<8x128xf32>
    %7 = math.exp %6 : vector<8x128xf32>
    %cst_5 = arith.constant 1.000000e+00 : f32
    %8 = vector.broadcast %cst_5 : f32 to vector<8x128xf32>
    %9 = arith.addf %8, %7 : vector<8x128xf32>
    %10 = arith.divf %8, %9 : vector<8x128xf32>
    %11 = arith.mulf %5, %10 : vector<8x128xf32>
    %c0_6 = arith.constant 0 : index
    %c0_7 = arith.constant 0 : index
    %12 = vector.load %arg4[%c0_6, %c0_7] : memref<128x128xf32, #tpu.memory_space<vmem>>, vector<128x128xf32>
    %cst_8 = arith.constant dense<0.000000e+00> : vector<8x128xf32>
    %13 = tpu.matmul %11, %12, %cst_8 {dimension_numbers = #tpu.dot_dimension_numbers<[1], [0], [0], [1], [0, 0, 1, 1], [], []>} : vector<8x128xf32>, vector<128x128xf32>, vector<8x128xf32> -> vector<8x128xf32>
    %c0_9 = arith.constant 0 : index
    %c0_10 = arith.constant 0 : index
    %14 = vector.load %arg5[%c0_9, %c0_10] : memref<1x128xf32, #tpu.memory_space<vmem>>, vector<1x128xf32>
    %15 = vector.broadcast %14 : vector<1x128xf32> to vector<8x128xf32>
    %16 = arith.addf %13, %15 : vector<8x128xf32>
    %17 = arith.negf %16 : vector<8x128xf32>
    %18 = math.exp %17 : vector<8x128xf32>
    %cst_11 = arith.constant 1.000000e+00 : f32
    %19 = vector.broadcast %cst_11 : f32 to vector<8x128xf32>
    %20 = arith.addf %19, %18 : vector<8x128xf32>
    %21 = arith.divf %19, %20 : vector<8x128xf32>
    %22 = arith.mulf %16, %21 : vector<8x128xf32>
    %23 = arith.addf %22, %0 : vector<8x128xf32>
    %c0_12 = arith.constant 0 : index
    %c0_13 = arith.constant 0 : index
    %24 = vector.load %arg6[%c0_12, %c0_13] : memref<8x128xf32, #tpu.memory_space<vmem>>, vector<8x128xf32>
    tpu.vector_store %arg6[%c0_12, %c0_13], %23 {strides = array<i32>} : memref<8x128xf32, #tpu.memory_space<vmem>>, vector<8x128xf32>,
    return
  }
  func.func @transform_0(%arg0: i32) -> (i32, i32) {
    %c0_i32 = arith.constant 0 : i32
    %c0_i32_0 = arith.constant 0 : i32
    return %arg0, %c0_i32 : i32, i32
  }
  func.func @transform_1(%arg0: i32) -> (i32, i32) {
    %c0_i32 = arith.constant 0 : i32
    %c0_i32_0 = arith.constant 0 : i32
    %c0_i32_1 = arith.constant 0 : i32
    return %c0_i32, %c0_i32_0 : i32, i32
  }
  func.func @transform_2(%arg0: i32) -> (i32, i32) {
    %c0_i32 = arith.constant 0 : i32
    %c0_i32_0 = arith.constant 0 : i32
    %c0_i32_1 = arith.constant 0 : i32
    return %c0_i32, %c0_i32_0 : i32, i32
  }
  func.func @transform_3(%arg0: i32) -> (i32, i32) {
    %c0_i32 = arith.constant 0 : i32
    %c0_i32_0 = arith.constant 0 : i32
    %c0_i32_1 = arith.constant 0 : i32
    return %c0_i32, %c0_i32_0 : i32, i32
  }
  func.func @transform_4(%arg0: i32) -> (i32, i32) {
    %c0_i32 = arith.constant 0 : i32
    %c0_i32_0 = arith.constant 0 : i32
    %c0_i32_1 = arith.constant 0 : i32
    return %c0_i32, %c0_i32_0 : i32, i32
  }
  func.func @transform_5(%arg0: i32) -> (i32, i32) {
    %c0_i32 = arith.constant 0 : i32
    %c0_i32_0 = arith.constant 0 : i32
    return %arg0, %c0_i32 : i32, i32
  }
}

</mosaic_0001>

<bundles_post_ra>
// kernel: tpu_custom_call.1
= control target key start
LH: loop header
LB: loop body
LE: loop exit
PB: predicated region body
PF: predicated region fallthrough
CT: control target
= control target key end

     0   :  { %10 = vsyncpa [#allocation3], 0  ;;  %s665_s0 = inlined_call_operand.hbm [shape: f32[8,128], index: 0, kind: input, shape index: {}]   ;;  %s666_s1 = inlined_call_operand.hbm [shape: f32[128,128], index: 1, kind: input, shape index: {}]   ;;  %s667_s2 = inlined_call_operand.vmem [shape: f32[1,128], index: 2, kind: input, shape index: {}]   ;;  %s668_s3 = inlined_call_operand.hbm [shape: f32[128,128], index: 3, kind: input, shape index: {}]   ;;  %s669_s4 = inlined_call_operand.vmem [shape: f32[1,128], index: 4, kind: input, shape index: {}]   ;;  %s670_s5 = inlined_call_operand.hbm [shape: f32[8,128], index: 5, kind: output, shape index: {}]  }
   0x1   :  { %11 = vsyncpa [#allocation6], 0 }
   0x2   :  { %12 = vsyncpa [#allocation4], 0  ;;  %s546_s18 = smov [#allocation5]   ;;  %s452_s22 = scalar_lea.hbm %s666_s1, 2048 }
   0x3   :  { %s28_s19 = sshll.u32 %s546_s18, 4  ;;  %p453_p0 = scmp.ne.s32.totalorder %s666_s1, %s452_s22  ;;  %s29_s19 = int_to_ptr.vmem [resolvable:$true] %s28_s19 }
   0x4   :  { %p456_p1 = scmp.lt.u32.totalorder %s452_s22, %s666_s1 }
   0x6   :  { %p458_p2 = pnand %p456_p1, %p453_p0 }
   0x8   :  { %461 = shalt.err (!%p458_p2)
}
   0x9   :  { %s462_s27 = scalar_lea.vmem %s29_s19, 2048  ;;  %p467_p4 = scmp.lt.s32.totalorder %s29_s19, %s29_s19 }
   0xa   :  { %p463_p3 = scmp.ne.s32.totalorder %s29_s19, %s462_s27  ;;  %p468_p5 = scmp.lt.s32.totalorder %s462_s27, %s462_s27 }
   0xc   :  { %p469_p6 = por %p468_p5, %p467_p4 }
   0xe   :  { %p470_p7 = pnand %p469_p6, %p463_p3 }
  0x10   :  { %473 = shalt.err (!%p470_p7)
}
  0x11   :  { %s547_s28 = smov 128   ;;  %s548_s29 = smov 8  }
  0x12   :  { %34 = dma.hbm_to_vmem [thread:$0]  %s666_s1, 2048, %s29_s19, [#allocation6], %s547_s28, %s547_s28, %s548_s29  }
  0x13   :  { %s549_s7 = smov [#allocation2]   ;;  %s550_s9 = smov [#allocation7]  }
  0x14   :  { %s19_s8 = sshll.u32 %s549_s7, 4  ;;  %s42_s10 = sshll.u32 %s550_s9, 4  ;;  %s20_s8 = int_to_ptr.vmem [resolvable:$true] %s19_s8  ;;  %s43_s10 = int_to_ptr.vmem [resolvable:$true] %s42_s10 }
  0x15   :  { %s474_s13 = scalar_lea.hbm %s665_s0, 128 }
  0x16   :  { %p475_p8 = scmp.ne.s32.totalorder %s665_s0, %s474_s13  ;;  %p478_p9 = scmp.lt.u32.totalorder %s474_s13, %s665_s0 }
  0x18   :  { %p480_p10 = pnand %p478_p9, %p475_p8 }
  0x1a   :  { %483 = shalt.err (!%p480_p10)
}
  0x1b   :  { %s484_s1 = scalar_lea.vmem %s20_s8, 128  ;;  %p489_p12 = scmp.lt.s32.totalorder %s20_s8, %s20_s8 }
  0x1c   :  { %p485_p11 = scmp.ne.s32.totalorder %s20_s8, %s484_s1  ;;  %p490_p13 = scmp.lt.s32.totalorder %s484_s1, %s484_s1 }
  0x1e   :  { %p491_p0 = por %p490_p13, %p489_p12 }
  0x20   :  { %p492_p1 = pnand %p491_p0, %p485_p11 }
  0x22   :  { %495 = shalt.err (!%p492_p1)
}
  0x23   :  { %22 = dma.hbm_to_vmem [thread:$0]  %s665_s0, 128, %s20_s8, [#allocation3]  }
  0x24   :  { %s496_s22 = scalar_lea.hbm %s668_s3, 2048 }
  0x25   :  { %p497_p2 = scmp.ne.s32.totalorder %s668_s3, %s496_s22  ;;  %p500_p3 = scmp.lt.u32.totalorder %s496_s22, %s668_s3 }
  0x27   :  { %p502_p4 = pnand %p500_p3, %p497_p2 }
  0x29   :  { %505 = shalt.err (!%p502_p4)
}
  0x2a   :  { %s506_s27 = scalar_lea.vmem %s43_s10, 2048  ;;  %p511_p6 = scmp.lt.s32.totalorder %s43_s10, %s43_s10 }
  0x2b   :  { %p507_p5 = scmp.ne.s32.totalorder %s43_s10, %s506_s27  ;;  %p512_p7 = scmp.lt.s32.totalorder %s506_s27, %s506_s27 }
  0x2d   :  { %p513_p8 = por %p512_p7, %p511_p6 }
  0x2f   :  { %p514_p9 = pnand %p513_p8, %p507_p5 }
  0x31   :  { %517 = shalt.err (!%p514_p9)
}
  0x32   :  { %48 = dma.hbm_to_vmem [thread:$0]  %s668_s3, 2048, %s43_s10, [#allocation6], %s547_s28, %s547_s28, %s548_s29  }
  0x33   :  { %540 = dma.done.wait [#allocation3], 128  }
  0x34   :  { %541 = vsyncadd [#allocation3], 4294967168 }
  0x35   :  { %542 = dma.done.wait [#allocation6], 4096  }
  0x36   :  { %543 = vsyncadd [#allocation6], 4294963200  ;;  %v551_v0 = vmov 0.0|0.0   ;;  %vm552_vm0 = vmmov 0   ;;  %v553_v1 = vmov 0.0   ;;  %v61_v2 = vld [vmem:[#allocation5] sm:$0xff] }
  0x37   :  { %387 = vmatprep.subr.bf16.mxu0 %v551_v0  ;;  %349 = vmatprep.mubr.msk.f32.mxu0 %vm552_vm0, %v553_v1  ;;  %v62_v3 = vld [vmem:[#allocation5 + $0x8] sm:$0xff]  ;;  %v63_v4 = vld [vmem:[#allocation5 + $0x10] sm:$0xff]  ;;  %v64_v6 = vld [vmem:[#allocation5 + $0x18] sm:$0xff] }
  0x38   :  { %411 = vmatprep.subr.bf16.mxu1 %v551_v0  ;;  %384 = vmatprep.mubr.msk.f32.mxu1 %vm552_vm0, %v553_v1  ;;  %v388_v5 = vpack.c.bf16 %v62_v3, %v61_v2  ;;  %v391_v7 = vpack.c.bf16 %v64_v6, %v63_v4  ;;  %v65_v8 = vld [vmem:[#allocation5 + $0x20] sm:$0xff]  ;;  %v66_v9 = vld [vmem:[#allocation5 + $0x28] sm:$0xff]  ;;  %v67_v11 = vld [vmem:[#allocation5 + $0x30] sm:$0xff] }
  0x39   :  { %v394_v10 = vpack.c.bf16 %v66_v9, %v65_v8  ;;  %v68_v12 = vld [vmem:[#allocation5 + $0x38] sm:$0xff]  ;;  %v69_v14 = vld [vmem:[#allocation5 + $0x40] sm:$0xff]  ;;  %v70_v15 = vld [vmem:[#allocation5 + $0x48] sm:$0xff] }
  0x3a   :  { %389 = vmatpush3.bf16.msra.mxu0 %v388_v5  ;;  %v397_v13 = vpack.c.bf16 %v68_v12, %v67_v11  ;;  %v400_v16 = vpack.c.bf16 %v70_v15, %v69_v14  ;;  %v71_v17 = vld [vmem:[#allocation5 + $0x50] sm:$0xff]  ;;  %v72_v18 = vld [vmem:[#allocation5 + $0x58] sm:$0xff]  ;;  %v73_v20 = vld [vmem:[#allocation5 + $0x60] sm:$0xff] }
  0x3b   :  { %390 = vmatprep.subr.bf16.mxu0 %v551_v0  ;;  %v403_v19 = vpack.c.bf16 %v72_v18, %v71_v17  ;;  %v74_v21 = vld [vmem:[#allocation5 + $0x68] sm:$0xff]  ;;  %v75_v23 = vld [vmem:[#allocation5 + $0x70] sm:$0xff]  ;;  %v76_v24 = vld [vmem:[#allocation5 + $0x78] sm:$0xff] }
  0x3c   :  { %v406_v22 = vpack.c.bf16 %v74_v21, %v73_v20  ;;  %v409_v25 = vpack.c.bf16 %v76_v24, %v75_v23  ;;  %v636_v26 = vld [vmem:[#allocation2] sm:$0xff]  ;;  %v161_v27 = vld [vmem:[#allocation7] sm:$0xff]  ;;  %v162_v28 = vld [vmem:[#allocation7 + $0x8] sm:$0xff] }
  0x3d   :  { %v412_v29 = vpack.c.bf16 %v162_v28, %v161_v27  ;;  %v163_v30 = vld [vmem:[#allocation7 + $0x10] sm:$0xff]  ;;  %v164_v31 = vld [vmem:[#allocation7 + $0x18] sm:$0xff]  ;;  %v165_v33 = vld [vmem:[#allocation7 + $0x20] sm:$0xff] }
  0x3e   :  { %392 = vmatpush3.bf16.msra.mxu0 %v391_v7  ;;  %v415_v32 = vpack.c.bf16 %v164_v31, %v163_v30  ;;  %v166_v34 = vld [vmem:[#allocation7 + $0x28] sm:$0xff]  ;;  %v167_v36 = vld [vmem:[#allocation7 + $0x30] sm:$0xff]  ;;  %v168_v37 = vld [vmem:[#allocation7 + $0x38] sm:$0xff] }
  0x3f   :  { %393 = vmatprep.subr.bf16.mxu0 %v551_v0  ;;  %413 = vmatpush3.bf16.msra.mxu1 %v412_v29  ;;  %v418_v35 = vpack.c.bf16 %v166_v34, %v165_v33  ;;  %v421_v38 = vpack.c.bf16 %v168_v37, %v167_v36  ;;  %v169_v39 = vld [vmem:[#allocation7 + $0x40] sm:$0xff]  ;;  %v170_v40 = vld [vmem:[#allocation7 + $0x48] sm:$0xff]  ;;  %v171_v42 = vld [vmem:[#allocation7 + $0x50] sm:$0xff] }
  0x40   :  { %414 = vmatprep.subr.bf16.mxu1 %v551_v0  ;;  %v424_v41 = vpack.c.bf16 %v170_v40, %v169_v39  ;;  %v172_v43 = vld [vmem:[#allocation7 + $0x58] sm:$0xff]  ;;  %v173_v45 = vld [vmem:[#allocation7 + $0x60] sm:$0xff]  ;;  %v174_v46 = vld [vmem:[#allocation7 + $0x68] sm:$0xff] }
  0x41   :  { %v427_v44 = vpack.c.bf16 %v172_v43, %v171_v42  ;;  %v430_v47 = vpack.c.bf16 %v174_v46, %v173_v45  ;;  %v175_v48 = vld [vmem:[#allocation7 + $0x70] sm:$0xff]  ;;  %v176_v49 = vld [vmem:[#allocation7 + $0x78] sm:$0xff] }
  0x42   :  { %395 = vmatpush3.bf16.msra.mxu0 %v394_v10  ;;  %v433_v50 = vpack.c.bf16 %v176_v49, %v175_v48  ;;  %v279_v51 = vld [vmem:[%s667_s2] ss:$0 sm:$0xff]  ;;  %s554_s2 = smov [#allocation8]  }
  0x43   :  { %396 = vmatprep.subr.bf16.mxu0 %v551_v0  ;;  %416 = vmatpush3.bf16.msra.mxu1 %v415_v32  ;;  %v281_v60 = vld [vmem:[%s669_s4] ss:$0 sm:$0xff]  ;;  %s269_s7 = sshll.u32 %s554_s2, 4  ;;  %s270_s7 = int_to_ptr.vmem [resolvable:$true] %s269_s7 }
  0x44   :  { %417 = vmatprep.subr.bf16.mxu1 %v551_v0  ;;  %s518_s8 = scalar_lea.vmem %s270_s7, 128  ;;  %p523_p11 = scmp.lt.s32.totalorder %s270_s7, %s270_s7 }
  0x45   :  { %p519_p10 = scmp.ne.s32.totalorder %s270_s7, %s518_s8  ;;  %p524_p12 = scmp.lt.s32.totalorder %s518_s8, %s518_s8 }
  0x46   :  { %398 = vmatpush3.bf16.msra.mxu0 %v397_v13 }
  0x47   :  { %399 = vmatprep.subr.bf16.mxu0 %v551_v0  ;;  %419 = vmatpush3.bf16.msra.mxu1 %v418_v35  ;;  %p525_p13 = por %p524_p12, %p523_p11 }
  0x48   :  { %420 = vmatprep.subr.bf16.mxu1 %v551_v0 }
  0x49   :  { %p526_p0 = pnand %p525_p13, %p519_p10 }
  0x4a   :  { %401 = vmatpush3.bf16.msra.mxu0 %v400_v16 }
  0x4b   :  { %402 = vmatprep.subr.bf16.mxu0 %v551_v0  ;;  %422 = vmatpush3.bf16.msra.mxu1 %v421_v38 }
  0x4c   :  { %423 = vmatprep.subr.bf16.mxu1 %v551_v0 }
  0x4e   :  { %404 = vmatpush3.bf16.msra.mxu0 %v403_v19 }
  0x4f   :  { %405 = vmatprep.subr.bf16.mxu0 %v551_v0  ;;  %425 = vmatpush3.bf16.msra.mxu1 %v424_v41 }
  0x50   :  { %426 = vmatprep.subr.bf16.mxu1 %v551_v0 }
  0x52   :  { %407 = vmatpush3.bf16.msra.mxu0 %v406_v22 }
  0x53   :  { %408 = vmatprep.subr.bf16.mxu0 %v551_v0  ;;  %428 = vmatpush3.bf16.msra.mxu1 %v427_v44 }
  0x54   :  { %429 = vmatprep.subr.bf16.mxu1 %v551_v0 }
  0x56   :  { %410 = vmatpush3.bf16.msra.mxu0 %v409_v25 }
  0x57   :  { %431 = vmatpush3.bf16.msra.mxu1 %v430_v47 }
  0x58   :  { %432 = vmatprep.subr.bf16.mxu1 %v551_v0 }
  0x59   :  { %350 = vmatmul.mubr.f32.vlgmr.msra.gmra.mrb[0].mxu0 %v636_v26 }
  0x5b   :  { %434 = vmatpush3.bf16.msra.mxu1 %v433_v50 }
 0x12c   :  { %v150_v52 = vpop.f32.mrb[0].mxu0 }
 0x12d   :  { %v151_v53 = vadd.f32 %v279_v51, %v150_v52  ;;  %v351_v54 = vpop.f32.mrb[1].mxu0 }
 0x12f   :  { %v280_v55 = vmul.f32 -1.442695, %v151_v53 }
 0x131   :  { %444 = vpow2.f32 %v280_v55 }
 0x13b   :  { %v445_v56 = vpop.eup %444 }
 0x13c   :  { %v157_v57 = vadd.f32 1.0, %v445_v56 }
 0x13e   :  { %446 = vrcp.f32 %v157_v57 }
 0x148   :  { %v447_v58 = vpop.eup %446 }
 0x149   :  { %v160_v59 = vmul.f32 %v447_v58, %v151_v53 }
 0x14b   :  { %385 = vmatmul.mubr.f32.vlgmr.msra.gmra.mrb[0].mxu1 %v160_v59 }
 0x21e   :  { %v250_v61 = vpop.f32.mrb[0].mxu1 }
 0x21f   :  { %v251_v62 = vadd.f32 %v281_v60, %v250_v61  ;;  %v386_v63 = vpop.f32.mrb[1].mxu1 }
 0x221   :  { %v282_v0 = vmul.f32 -1.442695, %v251_v62 }
 0x223   :  { %448 = vpow2.f32 %v282_v0 }
 0x22d   :  { %v449_v1 = vpop.eup %448 }
 0x22e   :  { %v257_v2 = vadd.f32 1.0, %v449_v1 }
 0x230   :  { %450 = vrcp.f32 %v257_v2 }
 0x23a   :  { %v451_v3 = vpop.eup %450 }
 0x23b   :  { %v260_v4 = vmul.f32 %v451_v3, %v251_v62 }
 0x23d   :  { %v261_v5 = vadd.f32 %v260_v4, %v636_v26 }
 0x23f   :  { %262 = vst [vmem:[#allocation8] sm:$0xff] %v261_v5 }
 0x240   :  { %529 = shalt.err (!%p526_p0)
}
 0x241   :  { %s530_s10 = scalar_lea.hbm %s670_s5, 128 }
 0x242   :  { %p531_p1 = scmp.ne.s32.totalorder %s670_s5, %s530_s10  ;;  %p534_p2 = scmp.lt.u32.totalorder %s530_s10, %s670_s5 }
 0x244   :  { %p536_p3 = pnand %p534_p2, %p531_p1 }
 0x246   :  { %539 = shalt.err (!%p536_p3)
}
 0x247   :  { %272 = dma.vmem_to_hbm [thread:$0]  %s270_s7, 128, %s670_s5, [#allocation4]  }
 0x248   :  { %544 = dma.done.wait [#allocation4], 128  }
 0x249   :  { %545 = vsyncadd [#allocation4], 4294967168 }
 0x24a   :  { %276 = vsyncpa [#allocation3], 1 }
 0x24b   :  { %277 = vsyncpa [#allocation6], 1 }
 0x24c   :  { %278 = vsyncpa [#allocation4], 1 }

</bundles_post_ra>
